<compile_context>
chip_gen: v5e
topology: v5e:2x2
jax: 0.10.0
libtpu: 0.0.40
codegen_flags: <defaults>
</compile_context>

<pallas_src>
import functools

import jax
import jax.numpy as jnp
from jax.experimental import pallas as pl
from jax.experimental.pallas import tpu as pltpu

F_PAD = 128  # lane-dense padded feature width


# ---------------------------------------------------------------------------
# Fused Pallas kernel: 2 x (GCNConv -> BatchNorm -> ReLU) for one graph batch
# ---------------------------------------------------------------------------
def graphnet_fused_kernel(adj_ref, x_ref, w1_ref, w2_ref, ss_ref, o_ref):
    # adj: raw 0/1 (A + I) knn adjacency (bf16, exact) for this batch, block-diagonal
    # across the graphs of the batch.  The GCN symmetric normalization reduces to the
    # scalar 1/(k+1) (constant knn degree) and is pre-folded into w1/w2 on the host.
    adj = adj_ref[0]                 # (BN, BN) bf16
    ss = ss_ref[...]                 # (4, F_PAD) f32: rows = [gamma1, beta1, gamma2, beta2]

    def layer(h_bf16, w_ref, gamma, beta):
        # GCNConv (bias omitted: cancels exactly in training-mode BatchNorm):
        #   y = (A+I)/(k+1) @ (H @ W)   with 1/(k+1) already folded into W.
        hw = jnp.dot(h_bf16, w_ref[...], preferred_element_type=jnp.float32)       # (BN, F_PAD)
        y = jnp.dot(adj, hw.astype(jnp.bfloat16), preferred_element_type=jnp.float32)
        # BatchNorm1d over all nodes of the batch (training-mode batch stats, eps=1e-5),
        # two-pass variance for robustness.
        mean = jnp.mean(y, axis=0, keepdims=True)
        d = y - mean
        var = jnp.mean(d * d, axis=0, keepdims=True)
        yn = d * jax.lax.rsqrt(var + 1e-5) * gamma + beta
        return jnp.maximum(yn, 0.0)   # ReLU

    h1 = layer(x_ref[0], w1_ref, ss[0:1, :], ss[1:2, :])
    h2 = layer(h1.astype(jnp.bfloat16), w2_ref, ss[2:3, :], ss[3:4, :])
    o_ref[0] = h2


def fused_graphnet(adj, x_pad, w1_pad, w2_pad, scale_shift):
    nb, bn, _ = adj.shape
    return pl.pallas_call(
        graphnet_fused_kernel,
        out_shape=jax.ShapeDtypeStruct((nb, bn, F_PAD), jnp.float32),
        grid=(nb,),
        in_specs=[
            pl.BlockSpec((1, bn, bn), lambda b: (b, 0, 0)),        # per-batch adjacency
            pl.BlockSpec((1, bn, F_PAD), lambda b: (b, 0, 0)),     # per-batch features
            pl.BlockSpec((F_PAD, F_PAD), lambda b: (0, 0)),        # w1: VMEM-resident
            pl.BlockSpec((F_PAD, F_PAD), lambda b: (0, 0)),        # w2: VMEM-resident
            pl.BlockSpec((4, F_PAD), lambda b: (0, 0)),            # BN affine: resident
        ],
        out_specs=pl.BlockSpec((1, bn, F_PAD), lambda b: (b, 0, 0)),
        compiler_params=pltpu.CompilerParams(dimension_semantics=("parallel",)),
    )(adj, x_pad, w1_pad, w2_pad, scale_shift)


# ---------------------------------------------------------------------------
# JAX glue: knn_graph -> dense 0/1 adjacency (no scatter: dense top-k compare)
# ---------------------------------------------------------------------------
def build_knn_adjacency(pos_xy, batch_ids, k):
    """Dense 0/1 adjacency matching PyG knn_graph (flow='source_to_target', loop=False)
    plus GCNConv's add_self_loops, for ONE batch of graphs.
    Built as a compare against the k-th smallest distance (no XLA scatter).
    Caveat: assumes every graph has > k nodes and distinct distances (no ties)."""
    n = pos_xy.shape[0]
    d2 = jnp.sum((pos_xy[:, None, :] - pos_xy[None, :, :]) ** 2, axis=-1)
    big = jnp.float32(1e30)
    same_batch = batch_ids[:, None] == batch_ids[None, :]
    d2 = jnp.where(same_batch, d2, big)                   # knn restricted per graph
    d2 = jnp.where(jnp.eye(n, dtype=bool), big, d2)       # loop=False
    neg_kth, _ = jax.lax.top_k(-d2, k)
    kth = -neg_kth[:, -1]                                  # k-th smallest distance per target
    adj = (d2 <= kth[:, None]).astype(jnp.float32)         # adj[i, j]=1 : edge j -> i
    adj = jnp.maximum(adj, jnp.eye(n, dtype=jnp.float32))  # GCNConv add_self_loops
    return adj.astype(jnp.bfloat16)                        # 0/1 exact in bf16


# ---------------------------------------------------------------------------
# Padding helpers (lane-dense layout)
# ---------------------------------------------------------------------------
def _pad_weight(w):
    fin, fout = w.shape
    return jnp.zeros((F_PAD, F_PAD), jnp.float32).at[:fin, :fout].set(w).astype(jnp.bfloat16)


def _pad_vec(v):
    return jnp.zeros((F_PAD,), jnp.float32).at[: v.shape[0]].set(v)


# ---------------------------------------------------------------------------
# GraphNet forward over NB independent graph batches
# ---------------------------------------------------------------------------
@functools.partial(jax.jit, static_argnames=("k",))
def graphnet_forward(pos_xy, batch_ids, x, params, k):
    """pos_xy: (NB, BN, 2) f32, batch_ids: (NB, BN) i32, x: (NB, BN, feat) f32."""
    assert len(params) == 2, "fused kernel is specialized to n_graph=2"
    adj = jax.vmap(build_knn_adjacency, in_axes=(0, 0, None))(pos_xy, batch_ids, k)

    nb, bn, feat = x.shape
    x_pad = jnp.zeros((nb, bn, F_PAD), jnp.float32).at[..., :feat].set(x).astype(jnp.bfloat16)

    (w1, g1, b1), (w2, g2, b2) = params
    # Constant-degree GCN normalization 1/(k+1) folded into the f32 weights (NOT into the
    # bf16 adjacency, where 1/7 would not be exact).
    norm = jnp.float32(1.0 / (k + 1))
    w1p = _pad_weight(w1 * norm)
    w2p = _pad_weight(w2 * norm)
    # packed per-layer BN affine params: rows = [gamma1, beta1, gamma2, beta2]
    scale_shift = jnp.stack([_pad_vec(g1), _pad_vec(b1), _pad_vec(g2), _pad_vec(b2)], axis=0)

    out_pad = fused_graphnet(adj, x_pad, w1p, w2p, scale_shift)
    return out_pad[..., : w2.shape[1]]


# ---------------------------------------------------------------------------
# Deterministic parameter init + example run
# ---------------------------------------------------------------------------
def init_params(key, planes):
    params = []
    for i in range(len(planes) - 1):
        fin, fout = planes[i], planes[i + 1]
        kw = jax.random.fold_in(key, i)
        # glorot-ish scaling for the GCNConv weight; BN affine params deterministic.
        # (GCNConv bias omitted: it cancels exactly in the training-mode BatchNorm.)
        w = jax.random.normal(kw, (fin, fout), jnp.float32) * (1.0 / jnp.sqrt(fin))
        gamma = jnp.ones((fout,), jnp.float32)
        beta = jnp.zeros((fout,), jnp.float32)
        params.append((w, gamma, beta))
    return tuple(params)


if __name__ == "__main__":
    key = jax.random.PRNGKey(0)
    k_pos, k_x, k_w = jax.random.split(key, 3)

    # Small shapes consistent with the module, arranged to fill the MXU:
    # 2 independent batches ("parallel" grid axis -> both v7x TCs), each batch is
    # 4 graphs x 32 nodes = 128 nodes; feat_size = 2*n_samples = 16.
    nb = 2
    graphs_per_batch, nodes_per_graph = 4, 32
    bn = graphs_per_batch * nodes_per_graph          # 128 nodes per batch
    feat_size = 16
    graph_planes = [16, 13, 10]                      # linear reduction, graph_out=10, n_graph=2
    k = 6

    pos_xy = jax.random.uniform(k_pos, (nb, bn, 2), jnp.float32)
    batch_ids = jnp.broadcast_to(
        jnp.repeat(jnp.arange(graphs_per_batch, dtype=jnp.int32), nodes_per_graph)[None, :],
        (nb, bn),
    )
    x = jax.random.normal(k_x, (nb, bn, feat_size), jnp.float32)

    params = init_params(k_w, graph_planes)

    out = graphnet_forward(pos_xy, batch_ids, x, params, k)
    jax.block_until_ready(out)
    assert out.shape == (nb, bn, graph_planes[-1])
    print("KERNEL_OK")
</pallas_src>

<mosaic_0001>
module attributes {stable_mosaic.version = 11 : i64} {
  func.func @graphnet_fused_kernel(%arg0: i32, %arg1: memref<1x128x128xbf16, #tpu.memory_space<vmem>>, %arg2: memref<1x128x128xbf16, #tpu.memory_space<vmem>>, %arg3: memref<128x128xbf16, #tpu.memory_space<vmem>>, %arg4: memref<128x128xbf16, #tpu.memory_space<vmem>>, %arg5: memref<4x128xf32, #tpu.memory_space<vmem>>, %arg6: memref<1x128x128xf32, #tpu.memory_space<vmem>>) attributes {dimension_semantics = [#tpu.dimension_semantics<parallel>], iteration_bounds = array<i64: 2>, scalar_prefetch = 0 : i64, scratch_operands = 0 : i64, tpu.core_type = #tpu.core_type<tc>, window_params = [{transform_indices = @transform_0, window_bounds = array<i64: 1, 128, 128>}, {transform_indices = @transform_1, window_bounds = array<i64: 1, 128, 128>}, {pipeline_mode = #tpu.pipeline_mode<synchronous>, transform_indices = @transform_2, window_bounds = array<i64: 128, 128>}, {pipeline_mode = #tpu.pipeline_mode<synchronous>, transform_indices = @transform_3, window_bounds = array<i64: 128, 128>}, {pipeline_mode = #tpu.pipeline_mode<synchronous>, transform_indices = @transform_4, window_bounds = array<i64: 4, 128>}, {transform_indices = @transform_5, window_bounds = array<i64: 1, 128, 128>}]} {
    %c0 = arith.constant 0 : index
    %c0_0 = arith.constant 0 : index
    %c0_1 = arith.constant 0 : index
    %0 = vector.load %arg1[%c0, %c0_0, %c0_1] : memref<1x128x128xbf16, #tpu.memory_space<vmem>>, vector<1x128x128xbf16>
    %1 = vector.shape_cast %0 : vector<1x128x128xbf16> to vector<128x128xbf16>
    %c0_2 = arith.constant 0 : index
    %c0_3 = arith.constant 0 : index
    %2 = vector.load %arg5[%c0_2, %c0_3] : memref<4x128xf32, #tpu.memory_space<vmem>>, vector<4x128xf32>
    %c0_4 = arith.constant 0 : index
    %c0_5 = arith.constant 0 : index
    %c0_6 = arith.constant 0 : index
    %3 = vector.load %arg2[%c0_4, %c0_5, %c0_6] : memref<1x128x128xbf16, #tpu.memory_space<vmem>>, vector<1x128x128xbf16>
    %4 = vector.shape_cast %3 : vector<1x128x128xbf16> to vector<128x128xbf16>
    %5 = vector.extract_strided_slice %2 {offsets = [0, 0], sizes = [1, 128], strides = [1, 1]} : vector<4x128xf32> to vector<1x128xf32>
    %6 = vector.extract_strided_slice %2 {offsets = [1, 0], sizes = [1, 128], strides = [1, 1]} : vector<4x128xf32> to vector<1x128xf32>
    %c0_7 = arith.constant 0 : index
    %c0_8 = arith.constant 0 : index
    %7 = vector.load %arg3[%c0_7, %c0_8] : memref<128x128xbf16, #tpu.memory_space<vmem>>, vector<128x128xbf16>
    %cst = arith.constant dense<0.000000e+00> : vector<128x128xf32>
    %8 = tpu.matmul %4, %7, %cst {dimension_numbers = #tpu.dot_dimension_numbers<[1], [0], [0], [1], [0, 0, 1, 1], [], []>} : vector<128x128xbf16>, vector<128x128xbf16>, vector<128x128xf32> -> vector<128x128xf32>
    %9 = arith.truncf %8 : vector<128x128xf32> to vector<128x128xbf16>
    %cst_9 = arith.constant dense<0.000000e+00> : vector<128x128xf32>
    %10 = tpu.matmul %1, %9, %cst_9 {dimension_numbers = #tpu.dot_dimension_numbers<[1], [0], [0], [1], [0, 0, 1, 1], [], []>} : vector<128x128xbf16>, vector<128x128xbf16>, vector<128x128xf32> -> vector<128x128xf32>
    %cst_10 = arith.constant dense<0.000000e+00> : vector<128xf32>
    %11 = vector.multi_reduction <add>, %10, %cst_10 [0] : vector<128x128xf32> to vector<128xf32>
    %12 = vector.shape_cast %11 : vector<128xf32> to vector<1x128xf32>
    %cst_11 = arith.constant 1.280000e+02 : f32
    %13 = vector.broadcast %cst_11 : f32 to vector<1x128xf32>
    %14 = arith.divf %12, %13 : vector<1x128xf32>
    %15 = vector.broadcast %14 : vector<1x128xf32> to vector<128x128xf32>
    %16 = arith.subf %10, %15 : vector<128x128xf32>
    %17 = arith.mulf %16, %16 : vector<128x128xf32>
    %cst_12 = arith.constant dense<0.000000e+00> : vector<128xf32>
    %18 = vector.multi_reduction <add>, %17, %cst_12 [0] : vector<128x128xf32> to vector<128xf32>
    %19 = vector.shape_cast %18 : vector<128xf32> to vector<1x128xf32>
    %cst_13 = arith.constant 1.280000e+02 : f32
    %20 = vector.broadcast %cst_13 : f32 to vector<1x128xf32>
    %21 = arith.divf %19, %20 : vector<1x128xf32>
    %cst_14 = arith.constant 9.99999974E-6 : f32
    %22 = vector.broadcast %cst_14 : f32 to vector<1x128xf32>
    %23 = arith.addf %21, %22 : vector<1x128xf32>
    %24 = math.rsqrt %23 : vector<1x128xf32>
    %25 = vector.broadcast %24 : vector<1x128xf32> to vector<128x128xf32>
    %26 = arith.mulf %16, %25 : vector<128x128xf32>
    %27 = vector.broadcast %5 : vector<1x128xf32> to vector<128x128xf32>
    %28 = arith.mulf %26, %27 : vector<128x128xf32>
    %29 = vector.broadcast %6 : vector<1x128xf32> to vector<128x128xf32>
    %30 = arith.addf %28, %29 : vector<128x128xf32>
    %cst_15 = arith.constant 0.000000e+00 : f32
    %31 = vector.broadcast %cst_15 : f32 to vector<128x128xf32>
    %32 = arith.maximumf %30, %31 : vector<128x128xf32>
    %33 = arith.truncf %32 : vector<128x128xf32> to vector<128x128xbf16>
    %34 = vector.extract_strided_slice %2 {offsets = [2, 0], sizes = [1, 128], strides = [1, 1]} : vector<4x128xf32> to vector<1x128xf32>
    %35 = vector.extract_strided_slice %2 {offsets = [3, 0], sizes = [1, 128], strides = [1, 1]} : vector<4x128xf32> to vector<1x128xf32>
    %c0_16 = arith.constant 0 : index
    %c0_17 = arith.constant 0 : index
    %36 = vector.load %arg4[%c0_16, %c0_17] : memref<128x128xbf16, #tpu.memory_space<vmem>>, vector<128x128xbf16>
    %cst_18 = arith.constant dense<0.000000e+00> : vector<128x128xf32>
    %37 = tpu.matmul %33, %36, %cst_18 {dimension_numbers = #tpu.dot_dimension_numbers<[1], [0], [0], [1], [0, 0, 1, 1], [], []>} : vector<128x128xbf16>, vector<128x128xbf16>, vector<128x128xf32> -> vector<128x128xf32>
    %38 = arith.truncf %37 : vector<128x128xf32> to vector<128x128xbf16>
    %cst_19 = arith.constant dense<0.000000e+00> : vector<128x128xf32>
    %39 = tpu.matmul %1, %38, %cst_19 {dimension_numbers = #tpu.dot_dimension_numbers<[1], [0], [0], [1], [0, 0, 1, 1], [], []>} : vector<128x128xbf16>, vector<128x128xbf16>, vector<128x128xf32> -> vector<128x128xf32>
    %cst_20 = arith.constant dense<0.000000e+00> : vector<128xf32>
    %40 = vector.multi_reduction <add>, %39, %cst_20 [0] : vector<128x128xf32> to vector<128xf32>
    %41 = vector.shape_cast %40 : vector<128xf32> to vector<1x128xf32>
    %cst_21 = arith.constant 1.280000e+02 : f32
    %42 = vector.broadcast %cst_21 : f32 to vector<1x128xf32>
    %43 = arith.divf %41, %42 : vector<1x128xf32>
    %44 = vector.broadcast %43 : vector<1x128xf32> to vector<128x128xf32>
    %45 = arith.subf %39, %44 : vector<128x128xf32>
    %46 = arith.mulf %45, %45 : vector<128x128xf32>
    %cst_22 = arith.constant dense<0.000000e+00> : vector<128xf32>
    %47 = vector.multi_reduction <add>, %46, %cst_22 [0] : vector<128x128xf32> to vector<128xf32>
    %48 = vector.shape_cast %47 : vector<128xf32> to vector<1x128xf32>
    %cst_23 = arith.constant 1.280000e+02 : f32
    %49 = vector.broadcast %cst_23 : f32 to vector<1x128xf32>
    %50 = arith.divf %48, %49 : vector<1x128xf32>
    %cst_24 = arith.constant 9.99999974E-6 : f32
    %51 = vector.broadcast %cst_24 : f32 to vector<1x128xf32>
    %52 = arith.addf %50, %51 : vector<1x128xf32>
    %53 = math.rsqrt %52 : vector<1x128xf32>
    %54 = vector.broadcast %53 : vector<1x128xf32> to vector<128x128xf32>
    %55 = arith.mulf %45, %54 : vector<128x128xf32>
    %56 = vector.broadcast %34 : vector<1x128xf32> to vector<128x128xf32>
    %57 = arith.mulf %55, %56 : vector<128x128xf32>
    %58 = vector.broadcast %35 : vector<1x128xf32> to vector<128x128xf32>
    %59 = arith.addf %57, %58 : vector<128x128xf32>
    %cst_25 = arith.constant 0.000000e+00 : f32
    %60 = vector.broadcast %cst_25 : f32 to vector<128x128xf32>
    %61 = arith.maximumf %59, %60 : vector<128x128xf32>
    %c0_26 = arith.constant 0 : index
    %c0_27 = arith.constant 0 : index
    %c0_28 = arith.constant 0 : index
    %62 = vector.load %arg6[%c0_26, %c0_27, %c0_28] : memref<1x128x128xf32, #tpu.memory_space<vmem>>, vector<1x128x128xf32>
    %63 = vector.shape_cast %62 : vector<1x128x128xf32> to vector<128x128xf32>
    %64 = vector.shape_cast %61 : vector<128x128xf32> to vector<1x128x128xf32>
    tpu.vector_store %arg6[%c0_26, %c0_27, %c0_28], %64 {strides = array<i32>} : memref<1x128x128xf32, #tpu.memory_space<vmem>>, vector<1x128x128xf32>,
    return
  }
  func.func @transform_0(%arg0: i32) -> (i32, i32, i32) {
    %c0_i32 = arith.constant 0 : i32
    %c0_i32_0 = arith.constant 0 : i32
    %c0_i32_1 = arith.constant 0 : i32
    return %arg0, %c0_i32, %c0_i32_0 : i32, i32, i32
  }
  func.func @transform_1(%arg0: i32) -> (i32, i32, i32) {
    %c0_i32 = arith.constant 0 : i32
    %c0_i32_0 = arith.constant 0 : i32
    %c0_i32_1 = arith.constant 0 : i32
    return %arg0, %c0_i32, %c0_i32_0 : i32, i32, i32
  }
  func.func @transform_2(%arg0: i32) -> (i32, i32) {
    %c0_i32 = arith.constant 0 : i32
    %c0_i32_0 = arith.constant 0 : i32
    %c0_i32_1 = arith.constant 0 : i32
    return %c0_i32, %c0_i32_0 : i32, i32
  }
  func.func @transform_3(%arg0: i32) -> (i32, i32) {
    %c0_i32 = arith.constant 0 : i32
    %c0_i32_0 = arith.constant 0 : i32
    %c0_i32_1 = arith.constant 0 : i32
    return %c0_i32, %c0_i32_0 : i32, i32
  }
  func.func @transform_4(%arg0: i32) -> (i32, i32) {
    %c0_i32 = arith.constant 0 : i32
    %c0_i32_0 = arith.constant 0 : i32
    %c0_i32_1 = arith.constant 0 : i32
    return %c0_i32, %c0_i32_0 : i32, i32
  }
  func.func @transform_5(%arg0: i32) -> (i32, i32, i32) {
    %c0_i32 = arith.constant 0 : i32
    %c0_i32_0 = arith.constant 0 : i32
    %c0_i32_1 = arith.constant 0 : i32
    return %arg0, %c0_i32, %c0_i32_0 : i32, i32, i32
  }
}

</mosaic_0001>

<bundles_post_ra>
// kernel: graphnet_forward.1
= control target key start
LH: loop header
LB: loop body
LE: loop exit
PB: predicated region body
PF: predicated region fallthrough
CT: control target
= control target key end

     0   :  { %s1348_s18 = smov 0   ;;  %s1690_s0 = inlined_call_operand.vmem [shape: bf16[2,128,128], index: 0, kind: input, shape index: {}]   ;;  %s1691_s1 = inlined_call_operand.vmem [shape: bf16[2,128,128], index: 1, kind: input, shape index: {}]   ;;  %s1692_s2 = inlined_call_operand.vmem [shape: bf16[128,128], index: 2, kind: input, shape index: {}]   ;;  %s1693_s3 = inlined_call_operand.vmem [shape: bf16[128,128], index: 3, kind: input, shape index: {}]   ;;  %s1694_s4 = inlined_call_operand.vmem [shape: f32[4,128], index: 4, kind: input, shape index: {}]   ;;  %s1695_s5 = inlined_call_operand.vmem [shape: f32[2,128,128], index: 5, kind: output, shape index: {}]  }
   0x1 LB: > { %s1118_s19 = sadd.s32 4294967295, %s1315_s18   ;;  %p1122_p0 = scmp.ge.s32.totalorder %s1315_s18, 1  ;;  %s1315_s18 = sphi %s1348_s18, %s15_s18  }
   0x2   : > { %p197_p1 = scmp.lt.s32.totalorder %s1315_s18, 3 }
   0x4   : > { %p198_p2 = pnand %p1122_p0, %p197_p1 }
   0x5   : > { %p230_p3 = scmp.lt.s32.totalorder (!%p198_p2), %s1118_s19, 1 }
   0x6   : > { %201 = sbr.rel (%p198_p2) target bundleno = 1309 (0x51d), region = 40 }
   0xb   : > { %v1285_v0 = vld [vmem:[%s1692_s2 + $0x38] sm:$0xff]  ;;  %v1284_v1 = vld [vmem:[%s1692_s2 + $0x30] sm:$0xff]  ;;  %v1283_v2 = vld [vmem:[%s1692_s2 + $0x28] sm:$0xff]  ;;  %s1697_s19 = smov (!%p230_p3, %s1118_s19), 1 }
   0xc   : > { %390 = vmatpush.bf16.msra.mxu0 %v1285_v0  ;;  %v1282_v3 = vld [vmem:[%s1692_s2 + $0x20] sm:$0xff]  ;;  %v1281_v4 = vld [vmem:[%s1692_s2 + $0x18] sm:$0xff]  ;;  %v1280_v5 = vld [vmem:[%s1692_s2 + $0x10] sm:$0xff]  ;;  %s1259_s9 = sshll.u32 %s1697_s19, 6  ;;  %s1261_s13 = sshll.u32 %s1697_s19, 7 }
   0xd   : > { %v1279_v6 = vld [vmem:[%s1692_s2 + $0x8] sm:$0xff]  ;;  %v1278_v7 = vld [vmem:[%s1692_s2] sm:$0xff]  ;;  %s239_s14 = scalar_lea.vmem %s1691_s1, %s1259_s9  ;;  %s234_s17 = scalar_lea.vmem %s1690_s0, %s1259_s9 }
   0xe   : > { %v1270_v8 = vld [vmem:[%s239_s14] sm:$0xff]  ;;  %v1271_v9 = vld [vmem:[%s239_s14 + $0x8] sm:$0xff]  ;;  %v1272_v10 = vld [vmem:[%s239_s14 + $0x10] sm:$0xff]  ;;  %s1668_s16 = scalar_lea.vmem %s1695_s5, %s1261_s13 }
   0xf   : > { %v1273_v11 = vld [vmem:[%s239_s14 + $0x18] sm:$0xff]  ;;  %v1274_v12 = vld [vmem:[%s239_s14 + $0x20] sm:$0xff]  ;;  %v1275_v13 = vld [vmem:[%s239_s14 + $0x28] sm:$0xff] }
  0x10   : > { %391 = vmatpush.bf16.msra.mxu0 %v1284_v1  ;;  %v1276_v14 = vld [vmem:[%s239_s14 + $0x30] sm:$0xff]  ;;  %v1277_v15 = vld [vmem:[%s239_s14 + $0x38] sm:$0xff]  ;;  %v1393_v40 = vld [vmem:[%s234_s17] sm:$0xff] }
  0x11   : > { %v1396_v41 = vld [vmem:[%s234_s17 + $0x8] sm:$0xff]  ;;  %v1399_v42 = vld [vmem:[%s234_s17 + $0x10] sm:$0xff]  ;;  %v1402_v43 = vld [vmem:[%s234_s17 + $0x18] sm:$0xff] }
  0x12   : > { %v1405_v44 = vld [vmem:[%s234_s17 + $0x20] sm:$0xff]  ;;  %v1408_v45 = vld [vmem:[%s234_s17 + $0x28] sm:$0xff]  ;;  %v1411_v46 = vld [vmem:[%s234_s17 + $0x30] sm:$0xff] }
  0x13   : > { %v1414_v47 = vld [vmem:[%s234_s17 + $0x38] sm:$0xff] }
  0x14   : > { %392 = vmatpush.bf16.msra.mxu0 %v1283_v2 }
  0x18   : > { %393 = vmatpush.bf16.msra.mxu0 %v1282_v3 }
  0x1c   : > { %394 = vmatpush.bf16.msra.mxu0 %v1281_v4 }
  0x20   : > { %395 = vmatpush.bf16.msra.mxu0 %v1280_v5 }
  0x24   : > { %396 = vmatpush.bf16.msra.mxu0 %v1279_v6  ;;  %v1317_v6 = vmov 128.0  }
  0x25   : > { %1303 = vrcp.f32 %v1317_v6 }
  0x28   : > { %397 = vmatpush.bf16.msra.mxu0 %v1278_v7 }
  0x2b   : > { %398 = vmatmul.bf16.vlgmr.msra.gmra.mxu0 %v1270_v8 }
  0x3b   : > { %403 = vmatmul.bf16.gmra.mxu0 %v1271_v9 }
  0x4b   : > { %408 = vmatmul.bf16.gmra.mxu0 %v1272_v10  ;;  %v1304_v10 = vpop.eup %1303 }
  0x4c   : > { %vm570_vm0 = vweird.f32 %v1304_v10 }
  0x5b   : > { %413 = vmatmul.bf16.gmra.mxu0 %v1273_v11 }
  0x6b   : > { %418 = vmatmul.bf16.gmra.mxu0 %v1274_v12 }
  0x7b   : > { %423 = vmatmul.bf16.gmra.mxu0 %v1275_v13  ;;  %v566_v13 = vmul.f32 128.0, %v1304_v10 }
  0x8b   : > { %428 = vmatmul.bf16.gmra.mxu0 %v1276_v14 }
  0x9b   : > { %433 = vmatmul.bf16.gmra.mxu0 %v1277_v15 }
  0xa8   : > { %v399_v16 = vpop.f32.mrf.mxu0 }
  0xb0   : > { %v401_v17 = vpop.f32.mrf.mxu0 }
  0xb1   : > { %v439_v18 = vpack.c.bf16 %v401_v17, %v399_v16  ;;  %v567_v17 = vsub.f32 1.0, %v566_v13 }
  0xb8   : > { %v404_v19 = vpop.f32.mrf.mxu0 }
  0xc0   : > { %v406_v20 = vpop.f32.mrf.mxu0 }
  0xc1   : > { %v440_v21 = vpack.c.bf16 %v406_v20, %v404_v19  ;;  %v568_v20 = vmul.f32 %v1304_v10, %v567_v17 }
  0xc8   : > { %v409_v22 = vpop.f32.mrf.mxu0 }
  0xd0   : > { %v411_v23 = vpop.f32.mrf.mxu0 }
  0xd1   : > { %v441_v24 = vpack.c.bf16 %v411_v23, %v409_v22  ;;  %v569_v23 = vadd.f32 %v1304_v10, %v568_v20  ;;  %v1290_v20 = vld [vmem:[%s1693_s3 + $0x20] sm:$0xff] }
  0xd8   : > { %v414_v25 = vpop.f32.mrf.mxu0 }
  0xe0   : > { %v416_v26 = vpop.f32.mrf.mxu0 }
  0xe1   : > { %v442_v27 = vpack.c.bf16 %v416_v26, %v414_v25  ;;  %v1426_v26 = vsel %vm570_vm0, %v1304_v10, %v569_v23 }
  0xe8   : > { %v419_v28 = vpop.f32.mrf.mxu0 }
  0xf0   : > { %v421_v29 = vpop.f32.mrf.mxu0 }
  0xf1   : > { %v443_v39 = vpack.c.bf16 %v421_v29, %v419_v28 }
  0xf8   : > { %v424_v30 = vpop.f32.mrf.mxu0 }
 0x100   : > { %v426_v31 = vpop.f32.mrf.mxu0 }
 0x101   : > { %v444_v38 = vpack.c.bf16 %v426_v31, %v424_v30 }
 0x108   : > { %v429_v32 = vpop.f32.mrf.mxu0 }
 0x110   : > { %v431_v33 = vpop.f32.mrf.mxu0 }
 0x111   : > { %v445_v37 = vpack.c.bf16 %v431_v33, %v429_v32 }
 0x118   : > { %v434_v34 = vpop.f32.mrf.mxu0 }
 0x120   : > { %v436_v35 = vpop.f32.mrf.mxu0 }
 0x121   : > { %v446_v36 = vpack.c.bf16 %v436_v35, %v434_v34 }
 0x123   : > { %495 = vmatpush.bf16.msra.mxu1 %v446_v36 }
 0x127   : > { %496 = vmatpush.bf16.msra.mxu1 %v445_v37 }
 0x12b   : > { %497 = vmatpush.bf16.msra.mxu1 %v444_v38 }
 0x12f   : > { %498 = vmatpush.bf16.msra.mxu1 %v443_v39 }
 0x133   : > { %499 = vmatpush.bf16.msra.mxu1 %v442_v27 }
 0x137   : > { %500 = vmatpush.bf16.msra.mxu1 %v441_v24 }
 0x13b   : > { %501 = vmatpush.bf16.msra.mxu1 %v440_v21 }
 0x13f   : > { %502 = vmatpush.bf16.msra.mxu1 %v439_v18 }
 0x142   : > { %503 = vmatmul.bf16.vlgmr.msra.gmra.mxu1 %v1393_v40 }
 0x152   : > { %508 = vmatmul.bf16.gmra.mxu1 %v1396_v41 }
 0x162   : > { %513 = vmatmul.bf16.gmra.mxu1 %v1399_v42 }
 0x172   : > { %518 = vmatmul.bf16.gmra.mxu1 %v1402_v43 }
 0x182   : > { %523 = vmatmul.bf16.gmra.mxu1 %v1405_v44 }
 0x192   : > { %528 = vmatmul.bf16.gmra.mxu1 %v1408_v45 }
 0x1a2   : > { %533 = vmatmul.bf16.gmra.mxu1 %v1411_v46 }
 0x1b2   : > { %538 = vmatmul.bf16.gmra.mxu1 %v1414_v47 }
 0x1bf   : > { %v504_v48 = vpop.f32.mrf.mxu1 }
 0x1c7   : > { %v506_v49 = vpop.f32.mrf.mxu1 }
 0x1c8   : > { %v544_v60 = vadd.f32 %v506_v49, %v504_v48 }
 0x1cf   : > { %v509_v50 = vpop.f32.mrf.mxu1 }
 0x1d0   : > { %v545_v61 = vadd.f32 %v544_v60, %v509_v50 }
 0x1d7   : > { %v511_v51 = vpop.f32.mrf.mxu1 }
 0x1d8   : > { %v546_v63 = vadd.f32 %v545_v61, %v511_v51 }
 0x1df   : > { %v514_v52 = vpop.f32.mrf.mxu1 }
 0x1e0   : > { %v547_v0 = vadd.f32 %v546_v63, %v514_v52 }
 0x1e7   : > { %v516_v53 = vpop.f32.mrf.mxu1 }
 0x1e8   : > { %v548_v1 = vadd.f32 %v547_v0, %v516_v53 }
 0x1ef   : > { %v519_v54 = vpop.f32.mrf.mxu1 }
 0x1f0   : > { %v549_v2 = vadd.f32 %v548_v1, %v519_v54 }
 0x1f7   : > { %v521_v55 = vpop.f32.mrf.mxu1 }
 0x1f8   : > { %v550_v4 = vadd.f32 %v549_v2, %v521_v55 }
 0x1ff   : > { %v524_v56 = vpop.f32.mrf.mxu1 }
 0x200   : > { %v551_v5 = vadd.f32 %v550_v4, %v524_v56 }
 0x207   : > { %v526_v57 = vpop.f32.mrf.mxu1 }
 0x208   : > { %v552_v7 = vadd.f32 %v551_v5, %v526_v57 }
 0x20f   : > { %v529_v58 = vpop.f32.mrf.mxu1 }
 0x210   : > { %v553_v8 = vadd.f32 %v552_v7, %v529_v58 }
 0x217   : > { %v1417_v59 = vpop.f32.mrf.mxu1 }
 0x218   : > { %v554_v11 = vadd.f32 %v553_v8, %v1417_v59  ;;  %v1292_v8 = vld [vmem:[%s1693_s3 + $0x30] sm:$0xff] }
 0x21f   : > { %v1419_v62 = vpop.f32.mrf.mxu1 }
 0x220   : > { %v555_v12 = vadd.f32 %v554_v11, %v1419_v62 }
 0x227   : > { %v1421_v3 = vpop.f32.mrf.mxu1 }
 0x228   : > { %v556_v14 = vadd.f32 %v555_v12, %v1421_v3 }
 0x22f   : > { %v539_v9 = vpop.f32.mrf.mxu1 }
 0x230   : > { %v557_v15 = vadd.f32 %v556_v14, %v539_v9  ;;  %v1291_v14 = vld [vmem:[%s1693_s3 + $0x28] sm:$0xff] }
 0x237   : > { %v541_v16 = vpop.f32.mrf.mxu1 }
 0x238   : > { %v558_v18 = vadd.f32 %v557_v15, %v541_v16 }
 0x23a   : > { %v559_v19 = vrot.slane %v558_v18, 4 }
 0x23c   : > { %v560_v21 = vadd.f32 %v559_v19, %v558_v18 }
 0x23e   : > { %v561_v22 = vrot.slane %v560_v21, 2 }
 0x240   : > { %v562_v24 = vadd.f32 %v561_v22, %v560_v21 }
 0x242   : > { %v563_v25 = vrot.slane %v562_v24, 1 }
 0x244   : > { %v564_v27 = vadd.f32 %v563_v25, %v562_v24  ;;  %v1289_v24 = vld [vmem:[%s1693_s3 + $0x18] sm:$0xff] }
 0x246   : > { %v572_v28 = vmul.f32 %v1426_v26, %v564_v27  ;;  %v1288_v27 = vld [vmem:[%s1693_s3 + $0x10] sm:$0xff] }
 0x248   : > { %v1429_v29 = vsub.f32 %v504_v48, %v572_v28  ;;  %v1431_v30 = vsub.f32 %v506_v49, %v572_v28  ;;  %v1433_v31 = vsub.f32 %v509_v50, %v572_v28  ;;  %v1439_v34 = vsub.f32 %v511_v51, %v572_v28 }
 0x249   : > { %v1441_v35 = vsub.f32 %v514_v52, %v572_v28  ;;  %v1445_v38 = vsub.f32 %v516_v53, %v572_v28  ;;  %v1449_v49 = vsub.f32 %v519_v54, %v572_v28  ;;  %v1453_v51 = vsub.f32 %v521_v55, %v572_v28  ;;  %v1293_v55 = vld [vmem:[%s1693_s3 + $0x38] sm:$0xff] }
 0x24a   : > { %v589_v32 = vmul.f32 %v1429_v29, %v1429_v29  ;;  %v590_v33 = vmul.f32 %v1431_v30, %v1431_v30  ;;  %v591_v36 = vmul.f32 %v1433_v31, %v1433_v31  ;;  %v592_v39 = vmul.f32 %v1439_v34, %v1439_v34  ;;  %776 = vmatpush.bf16.msra.mxu2 %v1293_v55 }
 0x24b   : > { %v593_v50 = vmul.f32 %v1441_v35, %v1441_v35  ;;  %v594_v52 = vmul.f32 %v1445_v38, %v1445_v38  ;;  %v1457_v63 = vsub.f32 %v524_v56, %v572_v28  ;;  %v595_v53 = vmul.f32 %v1449_v49, %v1449_v49 }
 0x24c   : > { %v605_v37 = vadd.f32 %v590_v33, %v589_v32  ;;  %v1461_v1 = vsub.f32 %v526_v57, %v572_v28  ;;  %v596_v54 = vmul.f32 %v1453_v51, %v1453_v51  ;;  %v1468_v4 = vsub.f32 %v529_v58, %v572_v28  ;;  %v1287_v33 = vld [vmem:[%s1693_s3 + $0x8] sm:$0xff] }
 0x24d   : > { %v597_v56 = vmul.f32 %v1457_v63, %v1457_v63  ;;  %v1473_v6 = vsub.f32 %v1417_v59, %v572_v28  ;;  %v1481_v10 = vsub.f32 %v1419_v62, %v572_v28  ;;  %v1486_v12 = vsub.f32 %v1421_v3, %v572_v28 }
 0x24e   : > { %v606_v48 = vadd.f32 %v605_v37, %v591_v36  ;;  %v598_v57 = vmul.f32 %v1461_v1, %v1461_v1  ;;  %v599_v58 = vmul.f32 %v1468_v4, %v1468_v4  ;;  %777 = vmatpush.bf16.msra.mxu2 %v1292_v8  ;;  %v1493_v15 = vsub.f32 %v539_v9, %v572_v28  ;;  %v1286_v37 = vld [vmem:[%s1693_s3] sm:$0xff] }
 0x24f   : > { %v600_v59 = vmul.f32 %v1473_v6, %v1473_v6  ;;  %v601_v62 = vmul.f32 %v1481_v10, %v1481_v10  ;;  %v588_v18 = vsub.f32 %v541_v16, %v572_v28  ;;  %v602_v3 = vmul.f32 %v1486_v12, %v1486_v12 }
 0x250   : > { %v607_v60 = vadd.f32 %v606_v48, %v592_v39  ;;  %v603_v21 = vmul.f32 %v1493_v15, %v1493_v15 }
 0x251   : > { %v604_v9 = vmul.f32 %v588_v18, %v588_v18 }
 0x252   : > { %v608_v61 = vadd.f32 %v607_v60, %v593_v50  ;;  %778 = vmatpush.bf16.msra.mxu2 %v1291_v14 }
 0x254   : > { %v609_v0 = vadd.f32 %v608_v61, %v594_v52 }
 0x256   : > { %v610_v2 = vadd.f32 %v609_v0, %v595_v53  ;;  %779 = vmatpush.bf16.msra.mxu2 %v1290_v20 }
 0x258   : > { %v611_v5 = vadd.f32 %v610_v2, %v596_v54  ;;  %v1520_v54 = vld [vmem:[%s1694_s4] sm:$0xf] }
 0x25a   : > { %v612_v7 = vadd.f32 %v611_v5, %v597_v56  ;;  %780 = vmatpush.bf16.msra.mxu2 %v1289_v24  ;;  %v1523_v56 = vperm.slane %v1520_v54, 0 }
 0x25c   : > { %v613_v11 = vadd.f32 %v612_v7, %v598_v57 }
 0x25e   : > { %v614_v13 = vadd.f32 %v613_v11, %v599_v58  ;;  %781 = vmatpush.bf16.msra.mxu2 %v1288_v27  ;;  %v1533_v58 = vperm.slane %v1520_v54, 1 }
 0x260   : > { %v615_v17 = vadd.f32 %v614_v13, %v600_v59 }
 0x262   : > { %v616_v19 = vadd.f32 %v615_v17, %v601_v62  ;;  %782 = vmatpush.bf16.msra.mxu2 %v1287_v33 }
 0x264   : > { %v617_v22 = vadd.f32 %v616_v19, %v602_v3 }
 0x266   : > { %v618_v23 = vadd.f32 %v617_v22, %v603_v21  ;;  %783 = vmatpush.bf16.msra.mxu2 %v1286_v37 }
 0x268   : > { %v619_v16 = vadd.f32 %v618_v23, %v604_v9 }
 0x26a   : > { %v620_v25 = vrot.slane %v619_v16, 4 }
 0x26c   : > { %v621_v28 = vadd.f32 %v620_v25, %v619_v16 }
 0x26e   : > { %v622_v32 = vrot.slane %v621_v28, 2 }
 0x270   : > { %v623_v36 = vadd.f32 %v622_v32, %v621_v28 }
 0x272   : > { %v624_v39 = vrot.slane %v623_v36, 1 }
 0x274   : > { %v625_v48 = vadd.f32 %v624_v39, %v623_v36 }
 0x276   : > { %v626_v50 = vmul.f32 %v625_v48, %v1426_v26 }
 0x278   : > { %v627_v60 = vadd.f32 1e-05, %v626_v50 }
 0x27a   : > { %1305 = vrsqrt.f32 %v627_v60  ;;  %vm634_vm2 = vweird.f32 %v627_v60 }
 0x280   : > { %v1306_v52 = vpop.eup %1305 }
 0x281   : > { %v629_v61 = vmul.f32 %v1306_v52, %v627_v60  ;;  %vm635_vm1 = vweird.f32 %v1306_v52 }
 0x282   : > { %vm636_vm3 = vmor %vm634_vm2, %vm635_vm1 }
 0x283   : > { %v630_v53 = vmul.f32 %v1306_v52, %v629_v61 }
 0x285   : > { %v631_v0 = vmul.f32 0.5, %v630_v53 }
 0x287   : > { %v632_v2 = vsub.f32 1.5, %v631_v0 }
 0x289   : > { %v633_v55 = vmul.f32 %v1306_v52, %v632_v2 }
 0x28b   : > { %v1525_v5 = vsel %vm636_vm3, %v1306_v52, %v633_v55 }
 0x28c   : > { %v653_v57 = vmul.f32 %v1525_v5, %v588_v18  ;;  %v638_v7 = vmul.f32 %v1525_v5, %v1429_v29  ;;  %v639_v8 = vmul.f32 %v1525_v5, %v1431_v30  ;;  %v640_v14 = vmul.f32 %v1525_v5, %v1433_v31 }
 0x28d   : > { %v641_v29 = vmul.f32 %v1525_v5, %v1439_v34  ;;  %v646_v20 = vmul.f32 %v1525_v5, %v1457_v63  ;;  %v647_v21 = vmul.f32 %v1525_v5, %v1461_v1  ;;  %v648_v22 = vmul.f32 %v1525_v5, %v1468_v4 }
 0x28e   : > { %v670_v11 = vmul.f32 %v1523_v56, %v653_v57  ;;  %v655_v59 = vmul.f32 %v1523_v56, %v638_v7  ;;  %v656_v13 = vmul.f32 %v1523_v56, %v639_v8  ;;  %v657_v3 = vmul.f32 %v1523_v56, %v640_v14 }
 0x28f   : > { %v658_v31 = vmul.f32 %v1523_v56, %v641_v29  ;;  %v663_v9 = vmul.f32 %v1523_v56, %v646_v20  ;;  %v664_v34 = vmul.f32 %v1523_v56, %v647_v21  ;;  %v649_v23 = vmul.f32 %v1525_v5, %v1473_v6 }
 0x290   : > { %v672_v62 = vadd.f32 %v1533_v58, %v655_v59  ;;  %v673_v17 = vadd.f32 %v1533_v58, %v656_v13  ;;  %v650_v24 = vmul.f32 %v1525_v5, %v1481_v10  ;;  %v674_v63 = vadd.f32 %v1533_v58, %v657_v3 }
 0x291   : > { %v665_v1 = vmul.f32 %v1523_v56, %v648_v22  ;;  %v651_v16 = vmul.f32 %v1525_v5, %v1486_v12  ;;  %v652_v4 = vmul.f32 %v1525_v5, %v1493_v15  ;;  %v680_v25 = vadd.f32 %v1533_v58, %v663_v9 }
 0x292   : > { %v688_v30 = vmax.f32 %v672_v62, 0.0  ;;  %v689_v18 = vmax.f32 %v673_v17, 0.0  ;;  %v681_v27 = vadd.f32 %v1533_v58, %v664_v34  ;;  %v666_v28 = vmul.f32 %v1523_v56, %v649_v23 }
 0x293   : > { %v667_v6 = vmul.f32 %v1523_v56, %v650_v24  ;;  %v682_v10 = vadd.f32 %v1533_v58, %v665_v1  ;;  %v668_v32 = vmul.f32 %v1523_v56, %v651_v16  ;;  %v669_v33 = vmul.f32 %v1523_v56, %v652_v4 }
 0x294   : > { %v704_v19 = vpack.c.bf16 %v689_v18, %v688_v30  ;;  %v687_v36 = vadd.f32 %v1533_v58, %v670_v11  ;;  %v696_v12 = vmax.f32 %v680_v25, 0.0  ;;  %v697_v37 = vmax.f32 %v681_v27, 0.0 }
 0x295   : > { %v683_v15 = vadd.f32 %v1533_v58, %v666_v28  ;;  %v684_v39 = vadd.f32 %v1533_v58, %v667_v6  ;;  %v698_v48 = vmax.f32 %v682_v10, 0.0  ;;  %v685_v50 = vadd.f32 %v1533_v58, %v668_v32 }
 0x296   : > { %784 = vmatmul.bf16.vlgmr.msra.gmra.mxu2 %v704_v19  ;;  %v686_v60 = vadd.f32 %v1533_v58, %v669_v33  ;;  %v703_v52 = vmax.f32 %v687_v36, 0.0  ;;  %v675_v61 = vadd.f32 %v1533_v58, %v658_v31  ;;  %v708_v53 = vpack.c.bf16 %v697_v37, %v696_v12 }
 0x297   : > { %v699_v0 = vmax.f32 %v683_v15, 0.0  ;;  %v700_v2 = vmax.f32 %v684_v39, 0.0  ;;  %v701_v55 = vmax.f32 %v685_v50, 0.0  ;;  %v690_v59 = vmax.f32 %v674_v63, 0.0 }
 0x298   : > { %v702_v57 = vmax.f32 %v686_v60, 0.0  ;;  %v691_v13 = vmax.f32 %v675_v61, 0.0  ;;  %v642_v62 = vmul.f32 %v1525_v5, %v1441_v35  ;;  %v643_v17 = vmul.f32 %v1525_v5, %v1445_v38 }
 0x299   : > { %v709_v7 = vpack.c.bf16 %v699_v0, %v698_v48  ;;  %v710_v8 = vpack.c.bf16 %v701_v55, %v700_v2  ;;  %v644_v31 = vmul.f32 %v1525_v5, %v1449_v49  ;;  %v645_v35 = vmul.f32 %v1525_v5, %v1453_v51 }
 0x29a   : > { %v711_v11 = vpack.c.bf16 %v703_v52, %v702_v57  ;;  %v705_v14 = vpack.c.bf16 %v691_v13, %v690_v59  ;;  %v659_v29 = vmul.f32 %v1523_v56, %v642_v62  ;;  %v660_v30 = vmul.f32 %v1523_v56, %v643_v17 }
 0x29b   : > { %v661_v38 = vmul.f32 %v1523_v56, %v644_v31  ;;  %v662_v22 = vmul.f32 %v1523_v56, %v645_v35 }
 0x29c   : > { %v676_v18 = vadd.f32 %v1533_v58, %v659_v29  ;;  %v677_v3 = vadd.f32 %v1533_v58, %v660_v30 }
 0x29d   : > { %v678_v9 = vadd.f32 %v1533_v58, %v661_v38  ;;  %v679_v34 = vadd.f32 %v1533_v58, %v662_v22 }
 0x29e   : > { %v692_v19 = vmax.f32 %v676_v18, 0.0  ;;  %v693_v20 = vmax.f32 %v677_v3, 0.0 }
 0x29f   : > { %v694_v23 = vmax.f32 %v678_v9, 0.0  ;;  %v695_v24 = vmax.f32 %v679_v34, 0.0 }
 0x2a0   : > { %v706_v21 = vpack.c.bf16 %v693_v20, %v692_v19 }
 0x2a1   : > { %v707_v63 = vpack.c.bf16 %v695_v24, %v694_v23 }
 0x2a6   : > { %789 = vmatmul.bf16.gmra.mxu2 %v705_v14 }
 0x2b6   : > { %794 = vmatmul.bf16.gmra.mxu2 %v706_v21 }
 0x2c6   : > { %799 = vmatmul.bf16.gmra.mxu2 %v707_v63 }
 0x2d6   : > { %804 = vmatmul.bf16.gmra.mxu2 %v708_v53 }
 0x2e6   : > { %809 = vmatmul.bf16.gmra.mxu2 %v709_v7 }
 0x2f6   : > { %814 = vmatmul.bf16.gmra.mxu2 %v710_v8 }
 0x306   : > { %819 = vmatmul.bf16.gmra.mxu2 %v711_v11 }
 0x319   : > { %v785_v49 = vpop.f32.mrf.mxu2 }
 0x321   : > { %v787_v1 = vpop.f32.mrf.mxu2 }
 0x322   : > { %v825_v51 = vpack.c.bf16 %v787_v1, %v785_v49 }
 0x329   : > { %v790_v5 = vpop.f32.mrf.mxu2 }
 0x331   : > { %v792_v16 = vpop.f32.mrf.mxu2 }
 0x332   : > { %v826_v4 = vpack.c.bf16 %v792_v16, %v790_v5 }
 0x339   : > { %v795_v25 = vpop.f32.mrf.mxu2 }
 0x341   : > { %v797_v56 = vpop.f32.mrf.mxu2 }
 0x342   : > { %v827_v27 = vpack.c.bf16 %v797_v56, %v795_v25 }
 0x349   : > { %v800_v28 = vpop.f32.mrf.mxu2 }
 0x351   : > { %v802_v6 = vpop.f32.mrf.mxu2 }
 0x352   : > { %v828_v58 = vpack.c.bf16 %v802_v6, %v800_v28 }
 0x359   : > { %v805_v10 = vpop.f32.mrf.mxu2 }
 0x361   : > { %v807_v32 = vpop.f32.mrf.mxu2 }
 0x362   : > { %v829_v52 = vpack.c.bf16 %v807_v32, %v805_v10 }
 0x369   : > { %v810_v33 = vpop.f32.mrf.mxu2 }
 0x371   : > { %v812_v36 = vpop.f32.mrf.mxu2 }
 0x372   : > { %v830_v60 = vpack.c.bf16 %v812_v36, %v810_v33 }
 0x379   : > { %v815_v12 = vpop.f32.mrf.mxu2 }
 0x381   : > { %v817_v37 = vpop.f32.mrf.mxu2 }
 0x382   : > { %v831_v50 = vpack.c.bf16 %v817_v37, %v815_v12 }
 0x389   : > { %v820_v15 = vpop.f32.mrf.mxu2 }
 0x391   : > { %v822_v39 = vpop.f32.mrf.mxu2 }
 0x392   : > { %v832_v48 = vpack.c.bf16 %v822_v39, %v820_v15 }
 0x394   : > { %833 = vmatpush.bf16.msra.mxu3 %v832_v48 }
 0x398   : > { %834 = vmatpush.bf16.msra.mxu3 %v831_v50 }
 0x39c   : > { %835 = vmatpush.bf16.msra.mxu3 %v830_v60 }
 0x3a0   : > { %836 = vmatpush.bf16.msra.mxu3 %v829_v52 }
 0x3a4   : > { %837 = vmatpush.bf16.msra.mxu3 %v828_v58 }
 0x3a8   : > { %838 = vmatpush.bf16.msra.mxu3 %v827_v27 }
 0x3ac   : > { %839 = vmatpush.bf16.msra.mxu3 %v826_v4 }
 0x3b0   : > { %840 = vmatpush.bf16.msra.mxu3 %v825_v51 }
 0x3b3   : > { %841 = vmatmul.bf16.vlgmr.msra.gmra.mxu3 %v1393_v40 }
 0x3c3   : > { %846 = vmatmul.bf16.gmra.mxu3 %v1396_v41 }
 0x3d3   : > { %851 = vmatmul.bf16.gmra.mxu3 %v1399_v42 }
 0x3e3   : > { %856 = vmatmul.bf16.gmra.mxu3 %v1402_v43 }
 0x3f3   : > { %861 = vmatmul.bf16.gmra.mxu3 %v1405_v44 }
 0x403   : > { %866 = vmatmul.bf16.gmra.mxu3 %v1408_v45 }
 0x413   : > { %871 = vmatmul.bf16.gmra.mxu3 %v1411_v46 }
 0x423   : > { %876 = vmatmul.bf16.gmra.mxu3 %v1414_v47 }
 0x436   : > { %v842_v61 = vpop.f32.mrf.mxu3 }
 0x43e   : > { %v844_v53 = vpop.f32.mrf.mxu3 }
 0x43f   : > { %v882_v11 = vadd.f32 %v844_v53, %v842_v61 }
 0x446   : > { %v847_v0 = vpop.f32.mrf.mxu3 }
 0x447   : > { %v883_v44 = vadd.f32 %v882_v11, %v847_v0 }
 0x44e   : > { %v849_v2 = vpop.f32.mrf.mxu3 }
 0x44f   : > { %v884_v45 = vadd.f32 %v883_v44, %v849_v2 }
 0x456   : > { %v852_v55 = vpop.f32.mrf.mxu3 }
 0x457   : > { %v885_v13 = vadd.f32 %v884_v45, %v852_v55 }
 0x45e   : > { %v854_v40 = vpop.f32.mrf.mxu3 }
 0x45f   : > { %v886_v46 = vadd.f32 %v885_v13, %v854_v40 }
 0x466   : > { %v857_v57 = vpop.f32.mrf.mxu3 }
 0x467   : > { %v887_v14 = vadd.f32 %v886_v46, %v857_v57 }
 0x46e   : > { %v859_v41 = vpop.f32.mrf.mxu3 }
 0x46f   : > { %v888_v62 = vadd.f32 %v887_v14, %v859_v41 }
 0x476   : > { %v862_v7 = vpop.f32.mrf.mxu3 }
 0x477   : > { %v889_v17 = vadd.f32 %v888_v62, %v862_v7 }
 0x47e   : > { %v864_v42 = vpop.f32.mrf.mxu3 }
 0x47f   : > { %v890_v29 = vadd.f32 %v889_v17, %v864_v42 }
 0x486   : > { %v867_v8 = vpop.f32.mrf.mxu3 }
 0x487   : > { %v891_v30 = vadd.f32 %v890_v29, %v867_v8 }
 0x48e   : > { %v869_v43 = vpop.f32.mrf.mxu3 }
 0x48f   : > { %v892_v3 = vadd.f32 %v891_v30, %v869_v43 }
 0x496   : > { %v872_v59 = vpop.f32.mrf.mxu3 }
 0x497   : > { %v893_v19 = vadd.f32 %v892_v3, %v872_v59 }
 0x49e   : > { %v874_v47 = vpop.f32.mrf.mxu3 }
 0x49f   : > { %v894_v20 = vadd.f32 %v893_v19, %v874_v47 }
 0x4a6   : > { %v877_v18 = vpop.f32.mrf.mxu3 }
 0x4a7   : > { %v895_v21 = vadd.f32 %v894_v20, %v877_v18 }
 0x4ae   : > { %v879_v31 = vpop.f32.mrf.mxu3 }
 0x4af   : > { %v896_v35 = vadd.f32 %v895_v21, %v879_v31 }
 0x4b1   : > { %v897_v38 = vrot.slane %v896_v35, 4 }
 0x4b3   : > { %v898_v22 = vadd.f32 %v897_v38, %v896_v35 }
 0x4b5   : > { %v899_v9 = vrot.slane %v898_v22, 2 }
 0x4b7   : > { %v900_v34 = vadd.f32 %v899_v9, %v898_v22 }
 0x4b9   : > { %v901_v23 = vrot.slane %v900_v34, 1 }
 0x4bb   : > { %v902_v24 = vadd.f32 %v901_v23, %v900_v34 }
 0x4bd   : > { %v903_v63 = vmul.f32 %v902_v24, %v1426_v26 }
 0x4bf   : > { %v1602_v49 = vsub.f32 %v842_v61, %v903_v63  ;;  %v1604_v1 = vsub.f32 %v844_v53, %v903_v63  ;;  %v1606_v51 = vsub.f32 %v847_v0, %v903_v63  ;;  %v1612_v4 = vsub.f32 %v849_v2, %v903_v63 }
 0x4c0   : > { %v1614_v25 = vsub.f32 %v852_v55, %v903_v63  ;;  %v1618_v28 = vsub.f32 %v854_v40, %v903_v63  ;;  %v1622_v10 = vsub.f32 %v857_v57, %v903_v63  ;;  %v1626_v36 = vsub.f32 %v859_v41, %v903_v63 }
 0x4c1   : > { %v920_v5 = vmul.f32 %v1602_v49, %v1602_v49  ;;  %v921_v16 = vmul.f32 %v1604_v1, %v1604_v1  ;;  %v922_v56 = vmul.f32 %v1606_v51, %v1606_v51  ;;  %v923_v6 = vmul.f32 %v1612_v4, %v1612_v4 }
 0x4c2   : > { %v924_v32 = vmul.f32 %v1614_v25, %v1614_v25  ;;  %v925_v12 = vmul.f32 %v1618_v28, %v1618_v28  ;;  %v1630_v15 = vsub.f32 %v862_v7, %v903_v63  ;;  %v926_v39 = vmul.f32 %v1622_v10, %v1622_v10 }
 0x4c3   : > { %v936_v27 = vadd.f32 %v921_v16, %v920_v5  ;;  %v1634_v50 = vsub.f32 %v864_v42, %v903_v63  ;;  %v927_v60 = vmul.f32 %v1626_v36, %v1626_v36  ;;  %v914_v61 = vsub.f32 %v867_v8, %v903_v63 }
 0x4c4   : > { %v928_v53 = vmul.f32 %v1630_v15, %v1630_v15  ;;  %v915_v2 = vsub.f32 %v869_v43, %v903_v63  ;;  %v1642_v57 = vsub.f32 %v872_v59, %v903_v63  ;;  %v917_v42 = vsub.f32 %v874_v47, %v903_v63 }
 0x4c5   : > { %v937_v58 = vadd.f32 %v936_v27, %v922_v56  ;;  %v929_v55 = vmul.f32 %v1634_v50, %v1634_v50  ;;  %v930_v41 = vmul.f32 %v914_v61, %v914_v61  ;;  %v918_v45 = vsub.f32 %v877_v18, %v903_v63 }
 0x4c6   : > { %v931_v11 = vmul.f32 %v915_v2, %v915_v2  ;;  %v932_v8 = vmul.f32 %v1642_v57, %v1642_v57  ;;  %v1646_v46 = vsub.f32 %v879_v31, %v903_v63  ;;  %v933_v14 = vmul.f32 %v917_v42, %v917_v42 }
 0x4c7   : > { %v938_v33 = vadd.f32 %v937_v58, %v923_v6  ;;  %v934_v62 = vmul.f32 %v918_v45, %v918_v45 }
 0x4c8   : > { %v935_v59 = vmul.f32 %v1646_v46, %v1646_v46 }
 0x4c9   : > { %v939_v37 = vadd.f32 %v938_v33, %v924_v32 }
 0x4cb   : > { %v940_v48 = vadd.f32 %v939_v37, %v925_v12  ;;  %v1002_v12 = vperm.slane %v1520_v54, 3 }
 0x4cd   : > { %v941_v52 = vadd.f32 %v940_v48, %v926_v39 }
 0x4cf   : > { %v942_v0 = vadd.f32 %v941_v52, %v927_v60 }
 0x4d1   : > { %v943_v40 = vadd.f32 %v942_v0, %v928_v53 }
 0x4d3   : > { %v944_v7 = vadd.f32 %v943_v40, %v929_v55 }
 0x4d5   : > { %v945_v44 = vadd.f32 %v944_v7, %v930_v41 }
 0x4d7   : > { %v946_v13 = vadd.f32 %v945_v44, %v931_v11 }
 0x4d9   : > { %v947_v43 = vadd.f32 %v946_v13, %v932_v8 }
 0x4db   : > { %v948_v17 = vadd.f32 %v947_v43, %v933_v14 }
 0x4dd   : > { %v949_v29 = vadd.f32 %v948_v17, %v934_v62 }
 0x4df   : > { %v950_v30 = vadd.f32 %v949_v29, %v935_v59 }
 0x4e1   : > { %v951_v3 = vrot.slane %v950_v30, 4 }
 0x4e3   : > { %v952_v47 = vadd.f32 %v951_v3, %v950_v30 }
 0x4e5   : > { %v953_v19 = vrot.slane %v952_v47, 2 }
 0x4e7   : > { %v954_v20 = vadd.f32 %v953_v19, %v952_v47 }
 0x4e9   : > { %v955_v18 = vrot.slane %v954_v20, 1 }
 0x4eb   : > { %v956_v21 = vadd.f32 %v955_v18, %v954_v20 }
 0x4ed   : > { %v957_v35 = vmul.f32 %v956_v21, %v1426_v26  ;;  %v985_v26 = vperm.slane %v1520_v54, 2 }
 0x4ef   : > { %v958_v38 = vadd.f32 1e-05, %v957_v35 }
 0x4f1   : > { %1307 = vrsqrt.f32 %v958_v38  ;;  %vm965_vm5 = vweird.f32 %v958_v38 }
 0x4f7   : > { %v1308_v31 = vpop.eup %1307 }
 0x4f8   : > { %v960_v22 = vmul.f32 %v1308_v31, %v958_v38  ;;  %vm966_vm4 = vweird.f32 %v1308_v31 }
 0x4f9   : > { %vm967_vm6 = vmor %vm965_vm5, %vm966_vm4 }
 0x4fa   : > { %v961_v9 = vmul.f32 %v1308_v31, %v960_v22 }
 0x4fc   : > { %v962_v34 = vmul.f32 0.5, %v961_v9 }
 0x4fe   : > { %v963_v23 = vsub.f32 1.5, %v962_v34 }
 0x500   : > { %v964_v24 = vmul.f32 %v1308_v31, %v963_v23 }
 0x502   : > { %v968_v63 = vsel %vm967_vm6, %v1308_v31, %v964_v24 }
 0x503   : > { %v969_v5 = vmul.f32 %v968_v63, %v1602_v49  ;;  %v970_v16 = vmul.f32 %v968_v63, %v1604_v1  ;;  %v971_v56 = vmul.f32 %v968_v63, %v1606_v51  ;;  %v972_v27 = vmul.f32 %v968_v63, %v1612_v4 }
 0x504   : > { %v973_v6 = vmul.f32 %v968_v63, %v1614_v25  ;;  %v974_v58 = vmul.f32 %v968_v63, %v1618_v28  ;;  %v979_v32 = vmul.f32 %v968_v63, %v914_v61  ;;  %v980_v33 = vmul.f32 %v968_v63, %v915_v2 }
 0x505   : > { %v975_v37 = vmul.f32 %v968_v63, %v1622_v10  ;;  %v986_v49 = vmul.f32 %v985_v26, %v969_v5  ;;  %v987_v39 = vmul.f32 %v985_v26, %v970_v16  ;;  %v988_v1 = vmul.f32 %v985_v26, %v971_v56 }
 0x506   : > { %v976_v51 = vmul.f32 %v968_v63, %v1626_v36  ;;  %v989_v48 = vmul.f32 %v985_v26, %v972_v27  ;;  %v977_v60 = vmul.f32 %v968_v63, %v1630_v15  ;;  %v990_v4 = vmul.f32 %v985_v26, %v973_v6 }
 0x507   : > { %v978_v52 = vmul.f32 %v968_v63, %v1634_v50  ;;  %v991_v25 = vmul.f32 %v985_v26, %v974_v58  ;;  %v992_v28 = vmul.f32 %v985_v26, %v975_v37  ;;  %v1003_v61 = vadd.f32 %v1002_v12, %v986_v49 }
 0x508   : > { %v1004_v53 = vadd.f32 %v1002_v12, %v987_v39  ;;  %v1005_v0 = vadd.f32 %v1002_v12, %v988_v1  ;;  %v993_v54 = vmul.f32 %v985_v26, %v976_v51  ;;  %v1006_v2 = vadd.f32 %v1002_v12, %v989_v48 }
 0x509   : > { %v981_v10 = vmul.f32 %v968_v63, %v1642_v57  ;;  %v982_v55 = vmul.f32 %v968_v63, %v917_v42  ;;  %v994_v40 = vmul.f32 %v985_v26, %v977_v60  ;;  %v1007_v41 = vadd.f32 %v1002_v12, %v990_v4 }
 0x50a   : > { %v983_v36 = vmul.f32 %v968_v63, %v918_v45  ;;  %v995_v15 = vmul.f32 %v985_v26, %v978_v52  ;;  %v996_v50 = vmul.f32 %v985_v26, %v979_v32  ;;  %v1008_v7 = vadd.f32 %v1002_v12, %v991_v25 }
 0x50b   : > { %v1009_v11 = vadd.f32 %v1002_v12, %v992_v28  ;;  %v1019_v44 = vmax.f32 %v1003_v61, 0.0  ;;  %v1020_v8 = vmax.f32 %v1004_v53, 0.0  ;;  %v1021_v13 = vmax.f32 %v1005_v0, 0.0 }
 0x50c   : > { %v984_v57 = vmul.f32 %v968_v63, %v1646_v46  ;;  %v997_v42 = vmul.f32 %v985_v26, %v980_v33  ;;  %v1010_v14 = vadd.f32 %v1002_v12, %v993_v54  ;;  %v1022_v43 = vmax.f32 %v1006_v2, 0.0 }
 0x50d   : > { %v998_v62 = vmul.f32 %v985_v26, %v981_v10  ;;  %v1011_v17 = vadd.f32 %v1002_v12, %v994_v40  ;;  %v1023_v59 = vmax.f32 %v1007_v41, 0.0  ;;  %1035 = vst [vmem:[%s1668_s16] sm:$0xff] %v1019_v44  ;;  %v999_v45 = vmul.f32 %v985_v26, %v982_v55 }
 0x50e   : > { %v1012_v29 = vadd.f32 %v1002_v12, %v995_v15  ;;  %v1024_v30 = vmax.f32 %v1008_v7, 0.0  ;;  %1036 = vst [vmem:[%s1668_s16 + $0x8] sm:$0xff] %v1020_v8  ;;  %v1000_v3 = vmul.f32 %v985_v26, %v983_v36  ;;  %v1013_v47 = vadd.f32 %v1002_v12, %v996_v50 }
 0x50f   : > { %v1025_v19 = vmax.f32 %v1009_v11, 0.0  ;;  %1037 = vst [vmem:[%s1668_s16 + $0x10] sm:$0xff] %v1021_v13  ;;  %v1001_v46 = vmul.f32 %v985_v26, %v984_v57  ;;  %v1014_v20 = vadd.f32 %v1002_v12, %v997_v42  ;;  %v1026_v18 = vmax.f32 %v1010_v14, 0.0 }
 0x510   : > { %1038 = vst [vmem:[%s1668_s16 + $0x18] sm:$0xff] %v1022_v43  ;;  %v1015_v21 = vadd.f32 %v1002_v12, %v998_v62  ;;  %v1027_v35 = vmax.f32 %v1011_v17, 0.0  ;;  %v1016_v38 = vadd.f32 %v1002_v12, %v999_v45  ;;  %v1028_v31 = vmax.f32 %v1012_v29, 0.0 }
 0x511   : > { %1039 = vst [vmem:[%s1668_s16 + $0x20] sm:$0xff] %v1023_v59  ;;  %v1017_v22 = vadd.f32 %v1002_v12, %v1000_v3  ;;  %v1029_v9 = vmax.f32 %v1013_v47, 0.0  ;;  %v1018_v34 = vadd.f32 %v1002_v12, %v1001_v46  ;;  %v1030_v23 = vmax.f32 %v1014_v20, 0.0 }
 0x512   : > { %1040 = vst [vmem:[%s1668_s16 + $0x28] sm:$0xff] %v1024_v30  ;;  %v1031_v24 = vmax.f32 %v1015_v21, 0.0  ;;  %v1032_v63 = vmax.f32 %v1016_v38, 0.0 }
 0x513   : > { %1041 = vst [vmem:[%s1668_s16 + $0x30] sm:$0xff] %v1025_v19  ;;  %v1033_v5 = vmax.f32 %v1017_v22, 0.0  ;;  %v1034_v16 = vmax.f32 %v1018_v34, 0.0 }
 0x514   : > { %1042 = vst [vmem:[%s1668_s16 + $0x38] sm:$0xff] %v1026_v18 }
 0x515   : > { %1043 = vst [vmem:[%s1668_s16 + $0x40] sm:$0xff] %v1027_v35 }
 0x516   : > { %1044 = vst [vmem:[%s1668_s16 + $0x48] sm:$0xff] %v1028_v31 }
 0x517   : > { %1045 = vst [vmem:[%s1668_s16 + $0x50] sm:$0xff] %v1029_v9 }
 0x518   : > { %1046 = vst [vmem:[%s1668_s16 + $0x58] sm:$0xff] %v1030_v23 }
 0x519   : > { %1047 = vst [vmem:[%s1668_s16 + $0x60] sm:$0xff] %v1031_v24 }
 0x51a   : > { %1048 = vst [vmem:[%s1668_s16 + $0x68] sm:$0xff] %v1032_v63 }
 0x51b   : > { %1049 = vst [vmem:[%s1668_s16 + $0x70] sm:$0xff] %v1033_v5 }
 0x51c   : > { %1050 = vst [vmem:[%s1668_s16 + $0x78] sm:$0xff] %v1034_v16 }
 0x51d PF: > { %s15_s18 = sadd.s32 1, %s1315_s18  }
 0x51e   : > { %p12_p4 = scmp.ge.s32.totalorder %s15_s18, 4  }
 0x520   :  { %14 = sbr.rel (!%p12_p4) target bundleno = 1 (0x1), region = 73 }

</bundles_post_ra>
